<compile_context>
chip_gen: v5e
topology: v5e:2x2
jax: 0.10.0
libtpu: 0.0.40
codegen_flags: <defaults>
</compile_context>

<pallas_src>
import math

import jax
import jax.numpy as jnp
from jax.experimental import pallas as pl
from jax.experimental.pallas import tpu as pltpu


# -----------------------------------------------------------------------------
# Pallas kernel
# -----------------------------------------------------------------------------
def _pe_add_kernel(x_ref, pe_ref, o_ref):
    # x_ref / o_ref: (1, S, D) tile for one batch element (VPU elementwise add).
    # pe_ref:        (S, D)   shared positional-encoding tile (resident in VMEM:
    #                          its index_map is constant across the grid).
    o_ref[0] = x_ref[0] + pe_ref[...]


# -----------------------------------------------------------------------------
# "Module" construction: sinusoidal PE buffer (built once, like register_buffer)
# -----------------------------------------------------------------------------
def sinusoidal_pe(max_len, d_model):
    pos = jnp.arange(max_len, dtype=jnp.float32)[:, None]
    div = jnp.exp(
        jnp.arange(0, d_model, 2, dtype=jnp.float32) * (-math.log(10000.0) / d_model)
    )
    pe = jnp.zeros((max_len, d_model), jnp.float32)
    pe = pe.at[:, 0::2].set(jnp.sin(pos * div))
    pe = pe.at[:, 1::2].set(jnp.cos(pos * div))
    return pe


# -----------------------------------------------------------------------------
# Forward: x (B, S, D) + pe[:S]   — one jitted pallas_call
# -----------------------------------------------------------------------------
@jax.jit
def positional_encoding_forward(x, pe_buffer):
    B, S, D = x.shape
    pe = pe_buffer[:S, :D]  # static slice under jit (shapes are static)

    return pl.pallas_call(
        _pe_add_kernel,
        out_shape=jax.ShapeDtypeStruct((B, S, D), x.dtype),
        grid=(B,),
        in_specs=[
            # Block = full (S, D) slab per batch element; last two block dims
            # equal the full array dims, so no (8, 128) divisibility issue.
            pl.BlockSpec((1, S, D), lambda b: (b, 0, 0)),
            # Same PE block for every grid step -> DMA'd once, stays in VMEM.
            pl.BlockSpec((S, D), lambda b: (0, 0)),
        ],
        out_specs=pl.BlockSpec((1, S, D), lambda b: (b, 0, 0)),
        compiler_params=pltpu.CompilerParams(
            # Batch axis is independent -> megacore/TC sharding on v7x,
            # plain short loop on v5e/v6e. No vmem_limit override needed.
            dimension_semantics=("parallel",),
        ),
    )(x, pe)


# -----------------------------------------------------------------------------
# Main
# -----------------------------------------------------------------------------
if __name__ == "__main__":
    B, S, D_MODEL, MAX_LEN = 2, 8, 128, 5000

    key = jax.random.PRNGKey(0)
    x = jax.random.normal(key, (B, S, D_MODEL), jnp.float32)

    # Built once at construction time (register_buffer equivalent).
    pe_buffer = jax.block_until_ready(sinusoidal_pe(MAX_LEN, D_MODEL))

    out = jax.block_until_ready(positional_encoding_forward(x, pe_buffer))

    # Pure-JAX reference with the PyTorch module's semantics.
    ref = x + pe_buffer[None, :S, :]
    assert out.shape == (B, S, D_MODEL)
    max_err = float(jnp.max(jnp.abs(out - ref)))
    assert max_err < 1e-6, f"mismatch vs reference: {max_err}"

    print("KERNEL_OK")
</pallas_src>

<mosaic_0001>
module attributes {stable_mosaic.version = 11 : i64} {
  func.func @_pe_add_kernel(%arg0: i32, %arg1: memref<1x8x128xf32, #tpu.memory_space<vmem>>, %arg2: memref<8x128xf32, #tpu.memory_space<vmem>>, %arg3: memref<1x8x128xf32, #tpu.memory_space<vmem>>) attributes {dimension_semantics = [#tpu.dimension_semantics<parallel>], iteration_bounds = array<i64: 2>, scalar_prefetch = 0 : i64, scratch_operands = 0 : i64, tpu.core_type = #tpu.core_type<tc>, window_params = [{transform_indices = @transform_0, window_bounds = array<i64: 1, 8, 128>}, {pipeline_mode = #tpu.pipeline_mode<synchronous>, transform_indices = @transform_1, window_bounds = array<i64: 8, 128>}, {transform_indices = @transform_2, window_bounds = array<i64: 1, 8, 128>}]} {
    %c0 = arith.constant 0 : index
    %c0_0 = arith.constant 0 : index
    %c0_1 = arith.constant 0 : index
    %0 = vector.load %arg1[%c0, %c0_0, %c0_1] : memref<1x8x128xf32, #tpu.memory_space<vmem>>, vector<1x8x128xf32>
    %1 = vector.shape_cast %0 : vector<1x8x128xf32> to vector<8x128xf32>
    %c0_2 = arith.constant 0 : index
    %c0_3 = arith.constant 0 : index
    %2 = vector.load %arg2[%c0_2, %c0_3] : memref<8x128xf32, #tpu.memory_space<vmem>>, vector<8x128xf32>
    %3 = arith.addf %1, %2 : vector<8x128xf32>
    %c0_4 = arith.constant 0 : index
    %c0_5 = arith.constant 0 : index
    %c0_6 = arith.constant 0 : index
    %4 = vector.load %arg3[%c0_4, %c0_5, %c0_6] : memref<1x8x128xf32, #tpu.memory_space<vmem>>, vector<1x8x128xf32>
    %5 = vector.shape_cast %4 : vector<1x8x128xf32> to vector<8x128xf32>
    %6 = vector.shape_cast %3 : vector<8x128xf32> to vector<1x8x128xf32>
    tpu.vector_store %arg3[%c0_4, %c0_5, %c0_6], %6 {strides = array<i32>} : memref<1x8x128xf32, #tpu.memory_space<vmem>>, vector<1x8x128xf32>,
    return
  }
  func.func @transform_0(%arg0: i32) -> (i32, i32, i32) {
    %c0_i32 = arith.constant 0 : i32
    %c0_i32_0 = arith.constant 0 : i32
    %c0_i32_1 = arith.constant 0 : i32
    return %arg0, %c0_i32, %c0_i32_0 : i32, i32, i32
  }
  func.func @transform_1(%arg0: i32) -> (i32, i32) {
    %c0_i32 = arith.constant 0 : i32
    %c0_i32_0 = arith.constant 0 : i32
    %c0_i32_1 = arith.constant 0 : i32
    return %c0_i32, %c0_i32_0 : i32, i32
  }
  func.func @transform_2(%arg0: i32) -> (i32, i32, i32) {
    %c0_i32 = arith.constant 0 : i32
    %c0_i32_0 = arith.constant 0 : i32
    %c0_i32_1 = arith.constant 0 : i32
    return %arg0, %c0_i32, %c0_i32_0 : i32, i32, i32
  }
}

</mosaic_0001>

<bundles_post_ra>
// kernel: positional_encoding_forward.1
= control target key start
LH: loop header
LB: loop body
LE: loop exit
PB: predicated region body
PF: predicated region fallthrough
CT: control target
= control target key end

     0   :  { %7 = vsyncpa [#allocation3], 0  ;;  %s552_s0 = inlined_call_operand.hbm [shape: f32[2,8,128], index: 0, kind: input, shape index: {}]   ;;  %s553_s1 = inlined_call_operand.vmem [shape: f32[8,128], index: 1, kind: input, shape index: {}]   ;;  %s554_s2 = inlined_call_operand.hbm [shape: f32[2,8,128], index: 2, kind: output, shape index: {}]  }
   0x1   :  { %9 = vsyncpa [#allocation3 + $0x1], 0 }
   0x2   :  { %10 = vsyncpa [#allocation4], 0 }
   0x3   :  { %12 = vsyncpa [#allocation4 + $0x1], 0  ;;  %s422_s9 = smov 0   ;;  %s424_s10 = smov 0  }
   0x4   :  { %s426_s11 = smov 0   ;;  %s428_s12 = smov 0  }
   0x5 LB: > { %s443_s13 = sadd.s32 4294967295, %s405_s12   ;;  %s251_s14 = sadd.s32 4294967294, %s405_s12   ;;  %s405_s12 = sphi %s428_s12, %s564_s12   ;;  %s401_s11 = sphi %s426_s11, %s563_s11   ;;  %s397_s10 = sphi %s424_s10, %s562_s10   ;;  %s393_s9 = sphi %s422_s9, %s561_s9  }
   0x6   : > { %s447_s15 = sadd.s32 1, %s405_s12   ;;  %s25_s16 = sadd.s32 1, %s401_s11 }
   0x7   : > { %s22_s17 = ssub.s32 %s405_s12, %s447_s15  ;;  %p32_p0 = scmp.ne.s32.totalorder %s401_s11, %s397_s10 }
   0x8   : > { %p23_p1 = scmp.eq.s32.totalorder %s22_s17, 0  ;;  %p33_p2 = scmp.eq.s32.totalorder %s405_s12, 0 }
   0x9   : > { %p38_p3 = scmp.ne.s32.totalorder %s397_s10, %s393_s9  ;;  %p39_p4 = scmp.eq.s32.totalorder %s443_s13, 0 }
   0xa   : > { %s459_s18 = scalar_select %p23_p1, %s401_s11, %s25_s16  }
   0xb   : > { %p461_p5 = por %p33_p2, %p32_p0  ;;  %p465_p6 = por %p39_p4, %p38_p3 }
   0xc   : > { %p83_p7 = scmp.eq.s32.totalorder %s443_s13, 1  ;;  %p89_p8 = scmp.eq.s32.totalorder %s251_s14, 1 }
   0xd   : > { %p275_p10 = scmp.lt.s32.totalorder %s405_s12, 2  ;;  %s112_s23 = sand.u32 1, %s401_s11  }
   0xe   : > { %p472_p11 = por %p83_p7, %p32_p0  ;;  %p476_p12 = por %p89_p8, %p38_p3 }
   0xf   : > { %s255_s24 = sshll.u32 %s405_s12, 3  ;;  %s254_s25 = sshll.u32 %s112_s23, 3 }
  0x10   : > { %s120_s28 = scalar_lea.hbm %s552_s0, %s255_s24  ;;  %s116_s30 = scalar_lea.vmem [#allocation2], %s254_s25 }
  0x11   : > { %s122_s29 = sshll.u32 %s120_s28, 4  ;;  %s124_s3 = sshll.u32 %s116_s30, 4  ;;  %s123_s29 = int_to_ptr.hbm [resolvable:$true] %s122_s29  ;;  %s125_s3 = int_to_ptr.vmem [resolvable:$true] %s124_s3 }
  0x12   : > { %p487_p13 = pnand %p275_p10, %p461_p5  ;;  %p256_p0 = scmp.ge.s32.totalorder %s405_s12, 1 }
  0x13   : > { %p129_p1 = scmp.lt.s32.totalorder %s405_s12, 3  ;;  %s113_s5 = scalar_lea.sflag [#allocation3], %s112_s23 }
  0x14   : > { %s309_s6 = sshra.s32 %s123_s29, 4  ;;  %p313_p3 = pneg %p487_p13  ;;  %s310_s6 = int_to_ptr.hbm [resolvable:$true] %s309_s6 }
  0x15   : > { %s311_s7 = scalar_lea.hbm %s310_s6, 8  ;;  %s316_s16 = scalar_lea.hbm %s552_s0, 16 }
  0x16   : > { %p312_p2 = scmp.ne.s32.totalorder %s310_s6, %s311_s7  ;;  %p317_p5 = scmp.lt.s32.totalorder %s310_s6, %s552_s0 }
  0x17   : > { %p318_p8 = scmp.lt.s32.totalorder %s316_s16, %s311_s7 }
  0x18   : > { %p314_p4 = pnand %p313_p3, %p312_p2 }
  0x19   : > { %p319_p10 = por %p318_p8, %p317_p5 }
  0x1a   : > { %p315_p7 = pneg %p314_p4 }
  0x1c   : > { %p320_p9 = pnand %p319_p10, %p315_p7 }
  0x1e   : > { %323 = shalt.err (!%p320_p9)
}
  0x1f   : > { %270 = dma.hbm_to_vmem [thread:$0]  (!%p487_p13), %s123_s29, 128, %s125_s3, %s113_s5  }
  0x20   : > { %p130_p2 = pnand %p256_p0, %p129_p1 }
  0x21   : > { %s508_s23 = sand.u32 (!%p130_p2), 1, %s397_s10  }
  0x22   : > { %133 = sbr.rel (%p130_p2) target bundleno = 55 (0x37), region = 28  ;;  %s257_s24 = sshll.u32 (!%p130_p2), %s508_s23, 3 }
  0x23   : > { %s136_s25 = scalar_lea.sflag (!%p130_p2), [#allocation3], %s508_s23  ;;  %s139_s26 = scalar_lea.vmem (!%p130_p2), [#allocation2], %s257_s24 }
  0x27   : > { %384 = dma.done.wait (%p465_p6), %s136_s25, 128  }
  0x28   : > { %386 = vsyncadd (%p465_p6), %s136_s25, 4294967168  ;;  %s260_s27 = sshll.u32 %s443_s13, 3  ;;  %s160_s3 = scalar_lea.vmem [#allocation5], %s257_s24  ;;  %v161_v0 = vld [vmem:[%s139_s26] sm:$0xff] }
  0x29   : > { %s176_s30 = scalar_lea.hbm %s554_s2, %s260_s27  ;;  %s178_s4 = sshll.u32 %s160_s3, 4  ;;  %v162_v1 = vld [vmem:[%s553_s1] sm:$0xff]  ;;  %s179_s4 = int_to_ptr.vmem [resolvable:$true] %s178_s4 }
  0x2a   : > { %s180_s5 = sshll.u32 %s176_s30, 4  ;;  %v163_v2 = vadd.f32 %v162_v1, %v161_v0  ;;  %s166_s20 = scalar_lea.sflag [#allocation4], %s508_s23  ;;  %s181_s5 = int_to_ptr.hbm [resolvable:$true] %s180_s5 }
  0x2b   : > { %s353_s8 = sshra.s32 %s181_s5, 4  ;;  %s359_s17 = scalar_lea.hbm %s554_s2, 16  ;;  %s354_s8 = int_to_ptr.hbm [resolvable:$true] %s353_s8 }
  0x2c   : > { %164 = vst [vmem:[%s160_s3] sm:$0xff] %v163_v2  ;;  %s355_s13 = scalar_lea.hbm %s354_s8, 8  ;;  %p360_p0 = scmp.lt.s32.totalorder %s354_s8, %s554_s2 }
  0x2d   : > { %p356_p6 = scmp.ne.s32.totalorder %s354_s8, %s355_s13  ;;  %p361_p1 = scmp.lt.s32.totalorder %s359_s17, %s355_s13 }
  0x2f   : > { %p357_p9 = pnand %p356_p6, %p472_p11  ;;  %p362_p3 = por %p361_p1, %p360_p0 }
  0x31   : > { %p358_p13 = pneg %p357_p9 }
  0x33   : > { %p363_p4 = pnand %p362_p3, %p358_p13 }
  0x35   : > { %366 = shalt.err (!%p363_p4)
}
  0x36   : > { %265 = dma.vmem_to_hbm [thread:$0]  (%p472_p11), %s179_s4, 128, %s181_s5, %s166_s20  }
  0x37 PF: > { %s192_s23 = sand.u32 1, %s393_s9   ;;  %p560_p7 = scmp.ge.s32.totalorder %s405_s12, 2 }
  0x38   : > { %s193_s25 = scalar_lea.sflag [#allocation4], %s192_s23 }
  0x39   : > { %p272_p5 = pnand %p560_p7, %p476_p12 }
  0x3b   : > { %p273_p8 = pneg %p272_p5 }
  0x3d   : > { %388 = dma.done.wait (%p273_p8), %s193_s25, 128  }
  0x3e   : > { %390 = vsyncadd (%p273_p8), %s193_s25, 4294967168  ;;  %p15_p10 = scmp.ge.s32.totalorder %s447_s15, 4   ;;  %s561_s9 = smov %s397_s10 }
  0x3f   : > { %s562_s10 = smov %s401_s11  ;;  %s563_s11 = smov %s459_s18 }
  0x40   : > { %s564_s12 = smov %s447_s15  ;;  %17 = sbr.rel (!%p15_p10) target bundleno = 5 (0x5), region = 73 }
  0x45   :  { %199 = vsyncpa [#allocation3], 1 }
  0x46   :  { %201 = vsyncpa [#allocation3 + $0x1], 1 }
  0x47   :  { %202 = vsyncpa [#allocation4], 1 }
  0x48   :  { %204 = vsyncpa [#allocation4 + $0x1], 1 }

</bundles_post_ra>
